<compile_context>
chip_gen: v6e
topology: v6e:2x2x1
jax: 0.10.0
libtpu: 0.0.40
codegen_flags: <defaults>
</compile_context>

<pallas_src>
import functools
import math

import jax
import jax.numpy as jnp
from jax.experimental import pallas as pl
from jax.experimental.pallas import tpu as pltpu


# --------------------------------------------------------------------------------------
# Kernels
# --------------------------------------------------------------------------------------

def _tap_accumulate(get_tap, w_ref, K):
    """acc = sum_k  w_ref[k] @ get_tap(k)   (f32 accumulation, K static)."""
    acc = None
    for k in range(K):
        part = jnp.dot(w_ref[k], get_tap(k), preferred_element_type=jnp.float32)
        acc = part if acc is None else acc + part
    return acc


def _conv1d_kernel_single(x_ref, w_ref, b_ref, o_ref, *, K, dilation, T_tile):
    # x_ref: (1, C_in, T_tile + halo)   padded input row (auto-pipelined block)
    # w_ref: (K, C_out_blk, C_in)       tap-major weight
    # b_ref: (C_out_blk, 1)             f32 bias
    # o_ref: (1, C_out_blk, T_tile)
    def tap(k):
        # Slice the Ref directly (static offsets) -> shifted vector loads, no copies.
        return x_ref[0, :, k * dilation:k * dilation + T_tile]

    acc = _tap_accumulate(tap, w_ref, K)
    o_ref[0] = (acc + b_ref[...]).astype(o_ref.dtype)


def _conv1d_kernel_tiled(x_hbm, w_ref, b_ref, o_ref, xbuf, sem, *, K, dilation,
                         T_tile, halo):
    # Manual double-buffered overlapping halo windows read straight from HBM.
    # grid = (N, num_tiles); batch axis "parallel", time axis "arbitrary".
    n = pl.program_id(0)
    j = pl.program_id(1)
    num_tiles = pl.num_programs(1)
    T_in_tile = T_tile + halo

    def window_copy(jj, slot):
        start = pl.multiple_of(jj * T_tile, 128)   # T_tile is a multiple of 128
        return pltpu.make_async_copy(
            x_hbm.at[n, :, pl.ds(start, T_in_tile)], xbuf.at[slot], sem.at[slot])

    @pl.when(j == 0)
    def _():
        window_copy(j, 0).start()            # first window of this batch row

    @pl.when(j + 1 < num_tiles)
    def _():
        window_copy(j + 1, (j + 1) % 2).start()   # prefetch next window

    slot = j % 2
    window_copy(j, slot).wait()

    def tap(k):
        return xbuf[slot, :, k * dilation:k * dilation + T_tile]

    acc = _tap_accumulate(tap, w_ref, K)
    o_ref[0] = (acc + b_ref[...]).astype(o_ref.dtype)


# --------------------------------------------------------------------------------------
# Wrapper
# --------------------------------------------------------------------------------------

def _round_up(x, m):
    return ((x + m - 1) // m) * m


def _vmem_capacity_bytes():
    try:
        return int(pltpu.get_tpu_info().vmem_capacity_bytes)
    except Exception:
        return 64 * 1024 * 1024   # conservative (v7x-sized) fallback


def _choose_t_tile(T_out, C_in, C_out, K, halo, x_isz, o_isz, w_isz, max_t_tile, budget):
    """Pick a lane-dense (multiple-of-128) time tile that fits the per-step VMEM budget."""
    def step_bytes(t):
        return (2 * C_in * (t + halo) * x_isz      # double-buffered input window
                + 2 * C_out * t * o_isz            # double-buffered output block
                + K * C_out * C_in * w_isz         # resident weight
                + C_out * t * 4                    # f32 accumulator
                + C_out * 4)                       # bias

    t_single = _round_up(max(T_out, 1), 128)       # lane-dense output, unmasked stores
    if t_single <= max_t_tile and step_bytes(t_single) <= budget:
        return t_single, 1

    t = min(max_t_tile, t_single)
    t = max(128, (t // 128) * 128)
    while t > 128 and step_bytes(t) > budget:
        t -= 128
    return t, pl.cdiv(T_out, t)


def conv_norm_forward(x, weight, bias, *, stride=1, dilation=1, padding=None,
                      compute_dtype=None, max_t_tile=None):
    """Forward pass of ConvNorm (torch.nn.Conv1d) via Pallas TPU kernels."""
    N, C_in, T = x.shape
    C_out, C_in_w, K = weight.shape
    assert C_in_w == C_in
    # TODO(synk): stride > 1 would need a strided output/tap gather; module default is 1.
    assert stride == 1, "only stride=1 (module default) supported"
    if padding is None:
        assert K % 2 == 1
        padding = int(dilation * (K - 1) / 2)

    halo = dilation * (K - 1)
    T_out = T + 2 * padding - halo   # stride == 1
    assert T_out >= 1

    out_dtype = x.dtype
    if compute_dtype is None:
        compute_dtype = x.dtype
    x_isz = jnp.dtype(compute_dtype).itemsize
    w_isz = jnp.dtype(compute_dtype).itemsize
    o_isz = jnp.dtype(out_dtype).itemsize

    # ---- Generation-aware VMEM budget (v7x: 64 MiB, v5e/v6e: 128 MiB) ------------------
    vmem_cap = _vmem_capacity_bytes()
    if max_t_tile is None:
        max_t_tile = 4096 if vmem_cap <= 80 * 1024 * 1024 else 8192
    budget = (vmem_cap * 3) // 8

    T_tile, num_tiles = _choose_t_tile(T_out, C_in, C_out, K, halo,
                                       x_isz, o_isz, w_isz, max_t_tile, budget)
    T_in_tile = T_tile + halo
    T_out_pad = num_tiles * T_tile

    # ---- One pad + one cast in the wrapper; no framing gather ---------------------------
    pad_left = padding
    pad_right = (T_out_pad + halo) - (T + pad_left)
    x_pad = jnp.pad(x, ((0, 0), (0, 0), (pad_left, pad_right))).astype(compute_dtype)

    # Tap-major weight: w3[k, o, c] = weight[o, c, k]; cast once (block stays resident).
    w3 = jnp.transpose(weight, (2, 0, 1)).astype(compute_dtype)
    bias2d = bias.astype(jnp.float32).reshape(C_out, 1)

    # Single-buffer the constant weight/bias blocks only when they are big enough to
    # matter for VMEM headroom.
    w_bytes = K * C_out * C_in * w_isz
    single_buffer_consts = w_bytes >= (1 << 20)

    def const_spec(shape, index_map, enable):
        if enable:
            return pl.BlockSpec(shape, index_map, pipeline_mode=pl.Buffered(1))
        return pl.BlockSpec(shape, index_map)

    step_vmem = (2 * C_in * T_in_tile * x_isz + 2 * C_out * T_tile * o_isz
                 + (1 if single_buffer_consts else 2) * w_bytes
                 + C_out * T_tile * 4 + C_out * 8)
    vmem_limit = int(min(int(vmem_cap * 0.85),
                         max(step_vmem + 16 * 1024 * 1024, 32 * 1024 * 1024)))

    cost = pl.CostEstimate(
        flops=int(2 * N * C_out * K * C_in * T_out_pad),
        transcendentals=0,
        bytes_accessed=int(x_pad.size * x_isz + w3.size * w_isz
                           + bias2d.size * 4 + N * C_out * T_out_pad * o_isz),
    )

    if num_tiles == 1:
        # Auto-pipelined, lane-dense single-tile path. When there is only one batch row,
        # split C_out so v7x's two TensorCores both get a parallel step.
        n_co = 2 if (N == 1 and C_out % 16 == 0) else 1
        C_out_blk = C_out // n_co
        sb = single_buffer_consts and n_co == 1   # only single-buffer truly constant blocks
        kernel = functools.partial(_conv1d_kernel_single, K=K, dilation=dilation,
                                   T_tile=T_tile)
        out_padded = pl.pallas_call(
            kernel,
            out_shape=jax.ShapeDtypeStruct((N, C_out, T_tile), out_dtype),
            grid_spec=pltpu.PrefetchScalarGridSpec(
                num_scalar_prefetch=0,
                grid=(N, n_co),
                in_specs=[
                    pl.BlockSpec((1, C_in, T_in_tile), lambda n, c: (n, 0, 0)),
                    const_spec((K, C_out_blk, C_in), lambda n, c: (0, c, 0), sb),
                    const_spec((C_out_blk, 1), lambda n, c: (c, 0), sb),
                ],
                out_specs=pl.BlockSpec((1, C_out_blk, T_tile), lambda n, c: (n, c, 0)),
            ),
            compiler_params=pltpu.CompilerParams(
                dimension_semantics=("parallel", "parallel"),
                vmem_limit_bytes=vmem_limit,
            ),
            cost_estimate=cost,
        )(x_pad, w3, bias2d)
    else:
        # Multi-tile path: raw padded input in HBM + manual double-buffered halo windows.
        kernel = functools.partial(_conv1d_kernel_tiled, K=K, dilation=dilation,
                                   T_tile=T_tile, halo=halo)
        out_padded = pl.pallas_call(
            kernel,
            out_shape=jax.ShapeDtypeStruct((N, C_out, T_out_pad), out_dtype),
            grid_spec=pltpu.PrefetchScalarGridSpec(
                num_scalar_prefetch=0,
                grid=(N, num_tiles),
                in_specs=[
                    pl.BlockSpec(memory_space=pl.ANY),   # padded input stays in HBM
                    const_spec((K, C_out, C_in), lambda n, j: (0, 0, 0),
                               single_buffer_consts),
                    const_spec((C_out, 1), lambda n, j: (0, 0), single_buffer_consts),
                ],
                out_specs=pl.BlockSpec((1, C_out, T_tile), lambda n, j: (n, 0, j)),
                scratch_shapes=[
                    pltpu.VMEM((2, C_in, T_in_tile), compute_dtype),
                    pltpu.SemaphoreType.DMA((2,)),
                ],
            ),
            compiler_params=pltpu.CompilerParams(
                # Time axis walks sequentially per batch row (manual double buffering);
                # the batch axis is sharded across TensorCores.
                dimension_semantics=("parallel", "arbitrary"),
                vmem_limit_bytes=vmem_limit,
            ),
            cost_estimate=cost,
        )(x_pad, w3, bias2d)

    if T_out_pad != T_out:
        out_padded = out_padded[:, :, :T_out]
    return out_padded


# --------------------------------------------------------------------------------------
# Init matching the PyTorch module + reference
# --------------------------------------------------------------------------------------

def make_params(key, in_channels, out_channels, kernel_size, w_init_gain="linear"):
    """Xavier-uniform weight init matching torch.nn.init.xavier_uniform_ (gain='linear')."""
    gain = 1.0  # calculate_gain('linear') == 1.0
    fan_in = in_channels * kernel_size
    fan_out = out_channels * kernel_size
    bound = gain * math.sqrt(6.0 / (fan_in + fan_out))
    wkey, bkey = jax.random.split(key)
    weight = jax.random.uniform(
        wkey, (out_channels, in_channels, kernel_size),
        minval=-bound, maxval=bound, dtype=jnp.float32)
    b_bound = 1.0 / math.sqrt(fan_in)
    bias = jax.random.uniform(
        bkey, (out_channels,), minval=-b_bound, maxval=b_bound, dtype=jnp.float32)
    return weight, bias


def _reference_conv(x, weight, bias, padding, dilation):
    C_out = weight.shape[0]
    return jax.lax.conv_general_dilated(
        x, weight,
        window_strides=(1,),
        padding=[(padding, padding)],
        rhs_dilation=(dilation,),
        dimension_numbers=("NCH", "OIH", "NCH"),
    ) + bias.reshape(1, C_out, 1)


if __name__ == "__main__":
    key = jax.random.PRNGKey(0)
    k1, k2, k3, k4 = jax.random.split(key, 4)

    # --- Test 1: small shapes, single-tile (lane-padded) path ----------------------
    N, C_in, C_out, T, K = 2, 4, 8, 16, 3
    x = jax.random.normal(k1, (N, C_in, T), dtype=jnp.float32)
    weight, bias = make_params(k2, C_in, C_out, K)

    out = jax.block_until_ready(conv_norm_forward(x, weight, bias))
    ref = _reference_conv(x, weight, bias, padding=K // 2, dilation=1)
    assert out.shape == (N, C_out, T), out.shape
    assert jnp.allclose(out, ref, atol=1e-4, rtol=1e-4), float(
        jnp.max(jnp.abs(out - ref)))

    # --- Test 2: dilated conv, exercises the manual-DMA multi-tile path --------------
    N2, C_in2, C_out2, T2, K2, dil2 = 2, 8, 16, 300, 5, 2
    x2 = jax.random.normal(k3, (N2, C_in2, T2), dtype=jnp.float32)
    weight2, bias2 = make_params(k4, C_in2, C_out2, K2)
    pad2 = int(dil2 * (K2 - 1) / 2)

    out2 = jax.block_until_ready(
        conv_norm_forward(x2, weight2, bias2, dilation=dil2, max_t_tile=128))
    ref2 = _reference_conv(x2, weight2, bias2, padding=pad2, dilation=dil2)
    assert out2.shape == (N2, C_out2, T2), out2.shape
    assert jnp.allclose(out2, ref2, atol=1e-3, rtol=1e-3), float(
        jnp.max(jnp.abs(out2 - ref2)))

    # --- Test 3: bf16 compute (wrapper-side casts, f32 accumulate) -------------------
    out3 = jax.block_until_ready(
        conv_norm_forward(x, weight, bias, compute_dtype=jnp.bfloat16))
    assert out3.shape == (N, C_out, T), out3.shape
    assert jnp.allclose(out3, ref, atol=6e-2, rtol=6e-2), float(
        jnp.max(jnp.abs(out3 - ref)))

    print("KERNEL_OK")
</pallas_src>

<mosaic_0001>
module attributes {stable_mosaic.version = 11 : i64} {
  func.func @_conv1d_kernel_single(%arg0: i32, %arg1: i32, %arg2: memref<1x4x130xf32, #tpu.memory_space<vmem>>, %arg3: memref<3x8x4xf32, #tpu.memory_space<vmem>>, %arg4: memref<8x1xf32, #tpu.memory_space<vmem>>, %arg5: memref<1x8x128xf32, #tpu.memory_space<vmem>>) attributes {dimension_semantics = [#tpu.dimension_semantics<parallel>, #tpu.dimension_semantics<parallel>], iteration_bounds = array<i64: 2, 1>, scalar_prefetch = 0 : i64, scratch_operands = 0 : i64, tpu.core_type = #tpu.core_type<tc>, window_params = [{transform_indices = @transform_0, window_bounds = array<i64: 1, 4, 130>}, {transform_indices = @transform_1, window_bounds = array<i64: 3, 8, 4>}, {transform_indices = @transform_2, window_bounds = array<i64: 8, 1>}, {transform_indices = @transform_3, window_bounds = array<i64: 1, 8, 128>}]} {
    %c0 = arith.constant 0 : index
    %c0_0 = arith.constant 0 : index
    %c0_1 = arith.constant 0 : index
    %0 = vector.load %arg3[%c0, %c0_0, %c0_1] : memref<3x8x4xf32, #tpu.memory_space<vmem>>, vector<1x8x4xf32>
    %1 = vector.shape_cast %0 : vector<1x8x4xf32> to vector<8x4xf32>
    %c0_2 = arith.constant 0 : index
    %c0_3 = arith.constant 0 : index
    %c0_4 = arith.constant 0 : index
    %2 = vector.load %arg2[%c0_2, %c0_3, %c0_4] : memref<1x4x130xf32, #tpu.memory_space<vmem>>, vector<1x4x128xf32>
    %3 = vector.shape_cast %2 : vector<1x4x128xf32> to vector<4x128xf32>
    %cst = arith.constant dense<0.000000e+00> : vector<8x128xf32>
    %4 = tpu.matmul %1, %3, %cst {dimension_numbers = #tpu.dot_dimension_numbers<[1], [0], [0], [1], [0, 0, 1, 1], [], []>} : vector<8x4xf32>, vector<4x128xf32>, vector<8x128xf32> -> vector<8x128xf32>
    %c1 = arith.constant 1 : index
    %c0_5 = arith.constant 0 : index
    %c0_6 = arith.constant 0 : index
    %5 = vector.load %arg3[%c1, %c0_5, %c0_6] : memref<3x8x4xf32, #tpu.memory_space<vmem>>, vector<1x8x4xf32>
    %6 = vector.shape_cast %5 : vector<1x8x4xf32> to vector<8x4xf32>
    %c0_7 = arith.constant 0 : index
    %c0_8 = arith.constant 0 : index
    %c1_9 = arith.constant 1 : index
    %7 = vector.load %arg2[%c0_7, %c0_8, %c1_9] : memref<1x4x130xf32, #tpu.memory_space<vmem>>, vector<1x4x128xf32>
    %8 = vector.shape_cast %7 : vector<1x4x128xf32> to vector<4x128xf32>
    %cst_10 = arith.constant dense<0.000000e+00> : vector<8x128xf32>
    %9 = tpu.matmul %6, %8, %cst_10 {dimension_numbers = #tpu.dot_dimension_numbers<[1], [0], [0], [1], [0, 0, 1, 1], [], []>} : vector<8x4xf32>, vector<4x128xf32>, vector<8x128xf32> -> vector<8x128xf32>
    %10 = arith.addf %4, %9 : vector<8x128xf32>
    %c2 = arith.constant 2 : index
    %c0_11 = arith.constant 0 : index
    %c0_12 = arith.constant 0 : index
    %11 = vector.load %arg3[%c2, %c0_11, %c0_12] : memref<3x8x4xf32, #tpu.memory_space<vmem>>, vector<1x8x4xf32>
    %12 = vector.shape_cast %11 : vector<1x8x4xf32> to vector<8x4xf32>
    %c0_13 = arith.constant 0 : index
    %c0_14 = arith.constant 0 : index
    %c2_15 = arith.constant 2 : index
    %13 = vector.load %arg2[%c0_13, %c0_14, %c2_15] : memref<1x4x130xf32, #tpu.memory_space<vmem>>, vector<1x4x128xf32>
    %14 = vector.shape_cast %13 : vector<1x4x128xf32> to vector<4x128xf32>
    %cst_16 = arith.constant dense<0.000000e+00> : vector<8x128xf32>
    %15 = tpu.matmul %12, %14, %cst_16 {dimension_numbers = #tpu.dot_dimension_numbers<[1], [0], [0], [1], [0, 0, 1, 1], [], []>} : vector<8x4xf32>, vector<4x128xf32>, vector<8x128xf32> -> vector<8x128xf32>
    %16 = arith.addf %10, %15 : vector<8x128xf32>
    %c0_17 = arith.constant 0 : index
    %c0_18 = arith.constant 0 : index
    %17 = vector.load %arg4[%c0_17, %c0_18] : memref<8x1xf32, #tpu.memory_space<vmem>>, vector<8x1xf32>
    %18 = vector.broadcast %17 : vector<8x1xf32> to vector<8x128xf32>
    %19 = arith.addf %16, %18 : vector<8x128xf32>
    %c0_19 = arith.constant 0 : index
    %c0_20 = arith.constant 0 : index
    %c0_21 = arith.constant 0 : index
    %20 = vector.load %arg5[%c0_19, %c0_20, %c0_21] : memref<1x8x128xf32, #tpu.memory_space<vmem>>, vector<1x8x128xf32>
    %21 = vector.shape_cast %20 : vector<1x8x128xf32> to vector<8x128xf32>
    %22 = vector.shape_cast %19 : vector<8x128xf32> to vector<1x8x128xf32>
    tpu.vector_store %arg5[%c0_19, %c0_20, %c0_21], %22 {strides = array<i32>} : memref<1x8x128xf32, #tpu.memory_space<vmem>>, vector<1x8x128xf32>,
    return
  }
  func.func @transform_0(%arg0: i32, %arg1: i32) -> (i32, i32, i32) {
    %c0_i32 = arith.constant 0 : i32
    %c0_i32_0 = arith.constant 0 : i32
    %c0_i32_1 = arith.constant 0 : i32
    return %arg0, %c0_i32, %c0_i32_0 : i32, i32, i32
  }
  func.func @transform_1(%arg0: i32, %arg1: i32) -> (i32, i32, i32) {
    %c0_i32 = arith.constant 0 : i32
    %c0_i32_0 = arith.constant 0 : i32
    %c0_i32_1 = arith.constant 0 : i32
    return %c0_i32, %arg1, %c0_i32_0 : i32, i32, i32
  }
  func.func @transform_2(%arg0: i32, %arg1: i32) -> (i32, i32) {
    %c0_i32 = arith.constant 0 : i32
    %c0_i32_0 = arith.constant 0 : i32
    return %arg1, %c0_i32 : i32, i32
  }
  func.func @transform_3(%arg0: i32, %arg1: i32) -> (i32, i32, i32) {
    %c0_i32 = arith.constant 0 : i32
    %c0_i32_0 = arith.constant 0 : i32
    return %arg0, %arg1, %c0_i32 : i32, i32, i32
  }
}

</mosaic_0001>

<bundles_post_ra>
// kernel: tpu_custom_call.1
= control target key start
LH: loop header
LB: loop body
LE: loop exit
PB: predicated region body
PF: predicated region fallthrough
CT: control target
= control target key end

     0   :  { %8 = vsyncpa [#allocation3], 0  ;;  %s921_s0 = inlined_call_operand.vmem [shape: f32[2,4,130], index: 0, kind: input, shape index: {}]   ;;  %s922_s1 = inlined_call_operand.vmem [shape: f32[3,8,4], index: 1, kind: input, shape index: {}]   ;;  %s923_s2 = inlined_call_operand.vmem [shape: f32[8,1], index: 2, kind: input, shape index: {}]   ;;  %s924_s3 = inlined_call_operand.hbm [shape: f32[2,8,128], index: 3, kind: output, shape index: {}]  }
   0x1   :  { %10 = vsyncpa [#allocation3 + $0x1], 0  ;;  %s801_s12 = smov 0   ;;  %s803_s13 = smov 0  }
   0x2   :  { %s805_s14 = smov 0   ;;  %s807_s15 = smov 0  }
   0x3   :  { %s809_s16 = smov 0   ;;  %s811_s17 = smov 0  }
   0x4 LB: > { %s591_s18 = sadd.s32 4294967295, %s773_s17   ;;  %s592_s19 = sadd.s32 4294967294, %s773_s17   ;;  %s773_s17 = sphi %s811_s17, %s16_s17   ;;  %s769_s16 = sphi %s809_s16, %s931_s16   ;;  %s765_s15 = sphi %s807_s15, %s930_s15   ;;  %s761_s14 = sphi %s805_s14, %s929_s14   ;;  %s757_s13 = sphi %s803_s13, %s928_s13   ;;  %s753_s12 = sphi %s801_s12, %s927_s12  }
   0x5   : > { %s28_s20 = sadd.s32 1, %s769_s16  ;;  %s115_s21 = sadd.s32 1, %s761_s14 }
   0x6   : > { %p30_p0 = scmp.ge.s32.totalorder %s28_s20, 2  ;;  %p125_p1 = scmp.ne.s32.totalorder %s761_s14, %s757_s13 }
   0x7   : > { %p126_p2 = scmp.eq.s32.totalorder %s591_s18, 1  ;;  %p131_p3 = scmp.ne.s32.totalorder %s757_s13, %s753_s12 }
   0x8   : > { %s933_s20 = smov (%p30_p0, %s28_s20), 0  ;;  %p132_p5 = scmp.eq.s32.totalorder %s592_s19, 1 }
   0x9   : > { %p841_p4 = por %p126_p2, %p125_p1  ;;  %s110_s23 = ssub.s32 %s769_s16, %s933_s20 }
   0xa   : > { %p597_p6 = scmp.ge.s32.totalorder %s773_s17, 1  ;;  %p113_p7 = scmp.eq.s32.totalorder %s110_s23, 0 }
   0xb   : > { %p848_p8 = por %p132_p5, %p131_p3  ;;  %p172_p9 = scmp.lt.s32.totalorder %s773_s17, 3 }
   0xc   : > { %s854_s25 = scalar_select %p113_p7, %s761_s14, %s115_s21  }
   0xd   : > { %p173_p10 = pnand %p597_p6, %p172_p9 }
   0xe   : > { %p204_p11 = scmp.lt.s32.totalorder (!%p173_p10), %s765_s15, 1  ;;  %s778_s6 = smov (!%p173_p10), 126  }
   0xf   : > { %176 = sbr.rel (%p173_p10) target bundleno = 360 (0x168), region = 32  ;;  %s779_s7 = smov (!%p173_p10), 127  }
  0x10   : > { %s201_s21 = sand.u32 (!%p173_p10), 1, %s757_s13  }
  0x11   : > { %s598_s23 = sshll.u32 (!%p173_p10), %s201_s21, 3  ;;  %s479_s5 = scalar_lea.sflag (!%p173_p10), [#allocation3], %s201_s21 }
  0x14   : > { %v775_v0 = vmov 0.0   ;;  %s205_s26 = scalar_select %p204_p11, %s765_s15, 1  ;;  %vm776_vm0 = vmmov 0   ;;  %vm234_vm1 = vcmask 1043456   ;;  %v777_v1 = vmov 0   ;;  %v217_v4 = vld [vmem:[%s922_s1] sm:$0xff] }
  0x15   : > { %620 = vmatprep.subr.mxu0 %v775_v0  ;;  %625 = vmatprep.subr.mxu1 %v775_v0  ;;  %vm230_vm2 = vcmask 31744   ;;  %v470_v6 = vld [vmem:[%s923_s2] sm:$0xff]  ;;  %vm228_vm3 = vcmask 1039360   ;;  %vm392_vm4 = vcmask 1031168   ;;  %v601_v11 = vld [vmem:[%s922_s1 + $0x8] sm:$0xff]  ;;  %v606_v14 = vld [vmem:[%s922_s1 + $0x10] sm:$0xff] }
  0x16   : > { %622 = vmatprep.mubr.msk.f32.mxu0 %vm776_vm0, %v775_v0  ;;  %627 = vmatprep.mubr.msk.f32.mxu1 %vm776_vm0, %v775_v0  ;;  %s613_s27 = sshll.u32 %s205_s26, 3  ;;  %s610_s26 = sshll.u32 %s765_s15, 7 }
  0x17   : > { %s208_s30 = scalar_lea.vmem %s921_s0, %s613_s27  ;;  %695 = vset.pattern.permute.xlu0 %v777_v1  ;;  %s203_s27 = scalar_lea.vmem [#allocation2], %s598_s23 }
  0x18   : > { %v385_v2 = vld [vmem:[%s208_s30] sm:$0xff]  ;;  %s493_s28 = sshll.u32 %s203_s27, 4  ;;  %s491_s4 = scalar_lea.hbm %s924_s3, %s610_s26  ;;  %s494_s28 = int_to_ptr.vmem [resolvable:$true] %s493_s28 }
  0x19   : > { %v218_v3 = vld [vmem:[%s208_s30] sm:$0xf]  ;;  %388 = vrot.lane.b32.xlu1 %v385_v2, %s778_s6  ;;  %v387_v5 = vcombine.high %v385_v2, %v385_v2  ;;  %224 = vrot.lane.b32.xlu0 %v385_v2, %s779_s7 }
  0x1a   : > { %626 = vmatpush3.msk.msra.mxu1 %vm234_vm1, %v218_v3 }
  0x1b   : > { %628 = vmatmul.mubr.msk.f32.vlgmr.msra.gmra.mxu1 %vm230_vm2, %v217_v4 }
  0x1d   : > { %390 = vrot.lane.b32.xlu1 %v387_v5, %s778_s6  ;;  %226 = vrot.lane.b32.xlu0 %v387_v5, %s779_s7  ;;  %s697_s6 = scalar_lea.vmem %s494_s28, 128  ;;  %s780_s7 = smov [#allocation2]  }
  0x1e   : > { %p698_p12 = scmp.ne.s32.totalorder %s494_s28, %s697_s6  ;;  %s701_s8 = sshll.u32 %s780_s7, 4  ;;  %s702_s8 = int_to_ptr.vmem [resolvable:$false] %s701_s8 }
  0x1f   : > { %s703_s15 = scalar_lea.vmem %s702_s8, 256  ;;  %p704_p1 = scmp.lt.s32.totalorder %s494_s28, %s702_s8 }
  0x20   : > { %p699_p13 = pnand %p698_p12, %p841_p4  ;;  %p705_p2 = scmp.lt.s32.totalorder %s703_s15, %s697_s6 }
  0x21   : > { %473 = vperm.xlu0 %695, %v470_v6  }
  0x22   : > { %p700_p0 = pneg %p699_p13  ;;  %p706_p3 = por %p705_p2, %p704_p1 }
  0x24   : > { %p707_p5 = pnand %p706_p3, %p700_p0 }
  0x8b   : > { %v389_v7 = vpop.permute.xlu1 %388  ;;  %v225_v8 = vpop.permute.xlu0 %224 }
  0x8f   : > { %v391_v9 = vpop.permute.xlu1 %390  ;;  %v227_v10 = vpop.permute.xlu0 %226 }
  0x90   : > { %v229_v12 = vsel %vm228_vm3, %v225_v8, %v227_v10  ;;  %v393_v13 = vsel %vm392_vm4, %v389_v7, %v391_v9 }
  0x91   : > { %621 = vmatpush3.msk.msra.mxu0 %vm234_vm1, %v229_v12 }
  0x92   : > { %623 = vmatmul.mubr.msk.f32.vlgmr.msra.gmra.mxu0 %vm230_vm2, %v601_v11  ;;  %630 = vmatprep.subr.mxu0 %v775_v0 }
  0x93   : > { %631 = vmatpush3.msk.msra.mxu0 %vm234_vm1, %v393_v13  ;;  %632 = vmatprep.mubr.msk.f32.mxu0 %vm776_vm0, %v775_v0 }
  0x96   : > { %633 = vmatmul.mubr.msk.f32.vlgmr.msra.gmra.mxu0 %vm230_vm2, %v606_v14 }
  0x9c   : > { %v474_v21 = vpop.permute.xlu0 %473 }
  0xdb   : > { %v379_v15 = vpop.f32.mrf.mxu1 }
  0xdd   : > { %v629_v16 = vpop.f32.mrf.mxu1 }
 0x152   : > { %v303_v17 = vpop.f32.mrf.mxu0 }
 0x153   : > { %v380_v19 = vadd.f32 %v379_v15, %v303_v17 }
 0x154   : > { %v624_v18 = vpop.f32.mrf.mxu0 }
 0x156   : > { %v465_v20 = vpop.f32.mrf.mxu0 }
 0x157   : > { %v469_v22 = vadd.f32 %v465_v20, %v380_v19 }
 0x158   : > { %v634_v23 = vpop.f32.mrf.mxu0 }
 0x159   : > { %v476_v24 = vadd.f32 %v474_v21, %v469_v22 }
 0x15b   : > { %477 = vst [vmem:[%s203_s27] sm:$0xff] %v476_v24 }
 0x15c   : > { %710 = shalt.err (!%p707_p5)
}
 0x15d   : > { %s711_s9 = scalar_lea.hbm %s491_s4, 128  ;;  %s715_s18 = scalar_lea.hbm %s924_s3, 256 }
 0x15e   : > { %p712_p6 = scmp.ne.s32.totalorder %s491_s4, %s711_s9  ;;  %p716_p10 = scmp.lt.s32.totalorder %s491_s4, %s924_s3 }
 0x15f   : > { %p717_p11 = scmp.lt.s32.totalorder %s715_s18, %s711_s9 }
 0x160   : > { %p713_p7 = pnand %p712_p6, %p841_p4 }
 0x161   : > { %p718_p12 = por %p717_p11, %p716_p10 }
 0x162   : > { %p714_p9 = pneg %p713_p7 }
 0x164   : > { %p719_p13 = pnand %p718_p12, %p714_p9 }
 0x166   : > { %722 = shalt.err (!%p719_p13)
}
 0x167   : > { %635 = dma.vmem_to_hbm [thread:$0]  (%p841_p4), %s494_s28, 128, %s491_s4, %s479_s5  }
 0x168 PF: > { %p641_p0 = scmp.ge.s32.totalorder %s773_s17, 2  ;;  %s505_s23 = sand.u32 1, %s753_s12  }
 0x169   : > { %s506_s26 = scalar_lea.sflag [#allocation3], %s505_s23 }
 0x16a   : > { %p638_p1 = pnand %p641_p0, %p848_p8 }
 0x16c   : > { %p639_p2 = pneg %p638_p1 }
 0x16e   : > { %748 = dma.done.wait (%p639_p2), %s506_s26, 128  }
 0x16f   : > { %750 = vsyncadd (%p639_p2), %s506_s26, 4294967168  ;;  %s16_s17 = sadd.s32 1, %s773_s17   ;;  %s927_s12 = smov %s757_s13 }
 0x170   : > { %p13_p3 = scmp.ge.s32.totalorder %s16_s17, 4   ;;  %s928_s13 = smov %s761_s14 }
 0x171   : > { %s929_s14 = smov %s854_s25  ;;  %s930_s15 = smov %s769_s16 }
 0x172   : > { %s931_s16 = smov %s933_s20  ;;  %15 = sbr.rel (!%p13_p3) target bundleno = 4 (0x4), region = 75 }
 0x177   :  { %511 = vsyncpa [#allocation3], 1 }
 0x178   :  { %513 = vsyncpa [#allocation3 + $0x1], 1 }

</bundles_post_ra>
